<compile_context>
chip_gen: v7x
topology: tpu7x:2x2x1
jax: 0.10.0
libtpu: 0.0.40
codegen_flags: <defaults>
</compile_context>

<pallas_src>
import functools

import jax
import jax.numpy as jnp
from jax.experimental import pallas as pl
from jax.experimental.pallas import tpu as pltpu


_OUT_LANES = 8   # stats live in lanes 0..2; 8-wide keeps the output block legal


# -----------------------------------------------------------------------------
# Pallas kernels
# -----------------------------------------------------------------------------
def _ce_tensor_lam_kernel(x_ref, t_ref, out_ref):
    """Per-row soft-CE loss (lane 0) + max_c |target - softmax(x)| (lane 1)."""
    x = x_ref[...].astype(jnp.float32)       # (TB, C)
    t = t_ref[...].astype(jnp.float32)       # (TB, C)

    m = jnp.max(x, axis=-1, keepdims=True)
    xm = x - m
    ex = jnp.exp(xm)
    s = jnp.sum(ex, axis=-1, keepdims=True)

    # sum_c -t * log_softmax(x) == log(s)*sum(t) - sum(t*(x-m))   (no logp temp)
    loss = (jnp.log(s) * jnp.sum(t, axis=-1, keepdims=True)
            - jnp.sum(t * xm, axis=-1, keepdims=True))

    # Exact reciprocal: scores are verified at ~1e-5 tolerance.
    p = ex * pl.reciprocal(s, approx=False)
    maxabs = jnp.max(jnp.abs(t - p), axis=-1, keepdims=True)

    lane = jax.lax.broadcasted_iota(jnp.int32, (x.shape[0], _OUT_LANES), 1)
    out_ref[...] = jnp.where(lane == 0, loss,
                             jnp.where(lane == 1, maxabs, 0.0))


def _ce_scalar_lam_kernel(x_ref, t_ref, idx_ref, out_ref):
    """Per-row soft-CE loss + |target - p| at the self / mix class indices.

    VPU-trimmed: instead of materialising p and |t - p| over the whole tile,
    ex and t are mask-reduced at the two class indices and the divide/abs run
    on (TB, 1) scalars.
    """
    x = x_ref[...].astype(jnp.float32)       # (TB, C)
    t = t_ref[...].astype(jnp.float32)       # (TB, C)

    m = jnp.max(x, axis=-1, keepdims=True)
    xm = x - m
    ex = jnp.exp(xm)
    s = jnp.sum(ex, axis=-1, keepdims=True)

    loss = (jnp.log(s) * jnp.sum(t, axis=-1, keepdims=True)
            - jnp.sum(t * xm, axis=-1, keepdims=True))

    col = jax.lax.broadcasted_iota(jnp.int32, ex.shape, 1)         # (TB, C)
    self_mask = col == idx_ref[:, 0:1]                             # (TB, C)
    mix_mask = col == idx_ref[:, 1:2]
    ex_self = jnp.sum(jnp.where(self_mask, ex, 0.0), axis=-1, keepdims=True)
    t_self = jnp.sum(jnp.where(self_mask, t, 0.0), axis=-1, keepdims=True)
    ex_mix = jnp.sum(jnp.where(mix_mask, ex, 0.0), axis=-1, keepdims=True)
    t_mix = jnp.sum(jnp.where(mix_mask, t, 0.0), axis=-1, keepdims=True)

    inv_s = pl.reciprocal(s, approx=False)                         # (TB, 1)
    selfsc = jnp.abs(t_self - ex_self * inv_s)
    mixsc = jnp.abs(t_mix - ex_mix * inv_s)

    lane = jax.lax.broadcasted_iota(jnp.int32, (x.shape[0], _OUT_LANES), 1)
    out_ref[...] = jnp.where(lane == 0, loss,
                             jnp.where(lane == 1, selfsc,
                                       jnp.where(lane == 2, mixsc, 0.0)))


# -----------------------------------------------------------------------------
# Hardware query + tile sizing / VMEM budgeting
# -----------------------------------------------------------------------------
@functools.lru_cache(maxsize=1)
def _tpu_vmem_and_cores():
    """(per-core VMEM bytes, TensorCores per chip); conservative on failure."""
    vmem_bytes = 64 << 20     # v7x per-TC VMEM = smallest current generation
    num_tc = 2                # assume megacore so the grid feeds every core
    try:
        info = pltpu.get_tpu_info()
        for attr in ("vmem_capacity_bytes", "vmem_size_bytes", "vmem_bytes"):
            v = getattr(info, attr, None)
            if v:
                vmem_bytes = int(v)
                break
        for attr in ("num_tensorcores", "tensorcores_per_chip", "num_cores",
                     "core_count"):
            v = getattr(info, attr, None)
            if v:
                num_tc = int(v)
                break
    except Exception:
        pass
    return vmem_bytes, num_tc


def _pick_tile(B, C, x_itemsize, t_itemsize):
    vmem_bytes, num_tc = _tpu_vmem_and_cores()
    # Double-buffered (x + target) input tiles use ~5/16 of per-core VMEM:
    # ~40 MiB on 128 MiB v5e/v6e, ~20 MiB on 64 MiB v7x.
    budget = (vmem_bytes * 5) // 16
    per_row = 2 * C * (x_itemsize + t_itemsize)      # 2 pipeline buffers per input
    tb = budget // max(per_row, 1)

    # Row alignment follows sublane packing of the narrowest input dtype
    # (8 rows for f32, 16 for bf16, 32 for int8/fp8).
    align = max(8, 32 // max(1, min(x_itemsize, t_itemsize)))
    tb = max(align, min(4096, tb))
    tb -= tb % align

    # Generation-aware minimum step count: ~3 pipelined steps per TensorCore so
    # the "parallel" grid axis feeds every core and the DMA pipeline overlaps,
    # without collapsing tiles the way the old ">=8 steps" rule did on
    # single-core chips.
    min_steps = 3 * max(1, num_tc)
    rows_per_step = -(-B // min_steps)               # ceil(B / min_steps)
    rows_per_step = -(-rows_per_step // align) * align
    tb = max(align, min(tb, rows_per_step))

    # TODO(synk): add a C-tiled online-softmax fallback (second grid axis over C
    # marked "arbitrary", running m/s/sum(t)/sum(t*xm) with pl.when
    # init/finalize) for vocab-scale C where even an `align`-row slab exceeds
    # the VMEM budget (notably on v7x's 64 MiB).
    return int(tb)


def _vmem_limit(tb, C, x_itemsize, t_itemsize):
    vmem_bytes, _ = _tpu_vmem_and_cores()
    footprint = 2 * tb * (C * (x_itemsize + t_itemsize) + 2 * 4 + _OUT_LANES * 4)
    # ~64 MiB ceiling on 128 MiB chips, ~48 MiB on 64 MiB v7x.
    ceiling = max(32 << 20, min(vmem_bytes - (16 << 20), 64 << 20))
    return int(min(ceiling, max(32 << 20, footprint + (8 << 20))))


# -----------------------------------------------------------------------------
# pallas_call wrappers
# -----------------------------------------------------------------------------
def _run_tensor_lam(x, target, tile_rows=None):
    B, C = x.shape
    tb = tile_rows or _pick_tile(B, C, x.dtype.itemsize, target.dtype.itemsize)
    row_spec = pl.BlockSpec((tb, C), lambda i: (i, 0))
    out_spec = pl.BlockSpec((tb, _OUT_LANES), lambda i: (i, 0))

    out = pl.pallas_call(
        _ce_tensor_lam_kernel,
        out_shape=jax.ShapeDtypeStruct((B, _OUT_LANES), jnp.float32),
        grid_spec=pltpu.PrefetchScalarGridSpec(
            num_scalar_prefetch=0,
            grid=(pl.cdiv(B, tb),),
            in_specs=[row_spec, row_spec],
            out_specs=out_spec,
        ),
        compiler_params=pltpu.CompilerParams(
            dimension_semantics=("parallel",),
            vmem_limit_bytes=_vmem_limit(tb, C, x.dtype.itemsize,
                                         target.dtype.itemsize)),
    )(x, target)
    stats = out[:, :3]
    return stats[:, 0], stats[:, 1]


def _run_scalar_lam(x, target, idx, tile_rows=None):
    B, C = x.shape
    tb = tile_rows or _pick_tile(B, C, x.dtype.itemsize, target.dtype.itemsize)
    row_spec = pl.BlockSpec((tb, C), lambda i: (i, 0))
    idx_spec = pl.BlockSpec((tb, 2), lambda i: (i, 0))
    out_spec = pl.BlockSpec((tb, _OUT_LANES), lambda i: (i, 0))

    out = pl.pallas_call(
        _ce_scalar_lam_kernel,
        out_shape=jax.ShapeDtypeStruct((B, _OUT_LANES), jnp.float32),
        grid_spec=pltpu.PrefetchScalarGridSpec(
            num_scalar_prefetch=0,
            grid=(pl.cdiv(B, tb),),
            in_specs=[row_spec, row_spec, idx_spec],
            out_specs=out_spec,
        ),
        compiler_params=pltpu.CompilerParams(
            dimension_semantics=("parallel",),
            vmem_limit_bytes=_vmem_limit(tb, C, x.dtype.itemsize,
                                         target.dtype.itemsize)),
    )(x, target, idx)
    stats = out[:, :3]
    return stats[:, 0], stats[:, 1], stats[:, 2]


# -----------------------------------------------------------------------------
# Plain-JAX glue: the torch.where/flip batch permutation.
# -----------------------------------------------------------------------------
def _compute_batch_permuted(res_weights):
    B = res_weights.shape[0]
    idx = jnp.arange(B, dtype=jnp.int32)
    mask = res_weights > 1.0

    def group_partner(m):
        mi = m.astype(jnp.int32)
        members = jnp.where(m, idx, B)          # non-members pushed to the end
        sorted_members = jnp.sort(members)      # group indices ascending, then B's
        n = jnp.sum(mi)
        rank = jnp.cumsum(mi) - 1               # rank of each member within group
        rev_rank = jnp.clip(n - 1 - rank, 0, B - 1)
        return sorted_members[rev_rank]         # flipped partner within group

    partner_hi = group_partner(mask)
    partner_lo = group_partner(jnp.logical_not(mask))
    return jnp.where(mask, partner_hi, partner_lo).astype(jnp.int32)


# -----------------------------------------------------------------------------
# Module forward (wrapper around the kernels).
# -----------------------------------------------------------------------------
def soft_target_cross_entropy_info_v3(x, target, lam, res_weights,
                                      target_argmax=None, tile_rows=None):
    """Returns (loss, scores) matching the PyTorch module.

    Prefer bf16 x/target produced upstream (the kernel upcasts internally);
    pass target_argmax (per-row int32 argmax of target) when available to
    avoid a second full HBM pass over target in the scalar-lam branch.
    """
    perm = _compute_batch_permuted(res_weights)

    if isinstance(lam, jnp.ndarray):
        loss, maxabs = _run_tensor_lam(x, target, tile_rows)
        scores = maxabs
        scores = (scores + scores[perm]) / (lam + (1.0 - lam)[perm])
    else:
        if target_argmax is None:
            # NOTE: extra full read of target; supply target_argmax upstream.
            ot = jnp.argmax(target, axis=-1).astype(jnp.int32)
        else:
            ot = target_argmax.astype(jnp.int32)
        if not (lam > 0.5):
            ot = ot[perm]
        idx = jnp.stack([ot, ot[perm]], axis=-1)          # (B, 2) int32
        loss, selfscores, mixscores = _run_scalar_lam(x, target, idx, tile_rows)
        scores = selfscores + mixscores[perm]

    return loss, scores


# -----------------------------------------------------------------------------
# Pure-JAX reference (mirrors the torch code) for verification.
# -----------------------------------------------------------------------------
def _reference(x, target, lam, res_weights):
    x = x.astype(jnp.float32)
    target = target.astype(jnp.float32)
    perm = _compute_batch_permuted(res_weights)
    logp = jax.nn.log_softmax(x, axis=-1)
    loss = jnp.sum(-target * logp, axis=-1)
    p = jax.nn.softmax(x, axis=-1)
    if isinstance(lam, jnp.ndarray):
        scores = jnp.max(jnp.abs(target - p), axis=-1)
        scores = (scores + scores[perm]) / (lam + (1.0 - lam)[perm])
    else:
        ot = jnp.argmax(target, axis=-1)
        if not (lam > 0.5):
            ot = ot[perm]
        rows = jnp.arange(x.shape[0])
        selfscores = jnp.abs(target[rows, ot] - p[rows, ot])
        mix_idx = ot[perm]
        mixscores = jnp.abs(target[rows, mix_idx] - p[rows, mix_idx])
        scores = selfscores + mixscores[perm]
    return loss, scores


if __name__ == "__main__":
    key = jax.random.PRNGKey(0)

    def make_inputs(B, C, dtype):
        kx, kt, kw, kl = jax.random.split(jax.random.fold_in(key, B * 1000 + C), 4)
        x = (jax.random.normal(kx, (B, C), dtype=jnp.float32) * 2.0).astype(dtype)
        target = jax.nn.softmax(
            jax.random.normal(kt, (B, C), dtype=jnp.float32) * 3.0, axis=-1
        ).astype(dtype)
        res_weights = 0.5 + jax.random.uniform(kw, (B,), dtype=jnp.float32)
        lam_t = 0.2 + 0.6 * jax.random.uniform(kl, (B,), dtype=jnp.float32)
        return x, target, res_weights, lam_t

    cases = []
    # Single full block, f32: scalar lam > 0.5, scalar lam <= 0.5, tensor lam.
    x, t, w, lam_t = make_inputs(8, 16, jnp.float32)
    cases += [(x, t, 0.8, w, None, None),
              (x, t, 0.3, w, None, None),
              (x, t, lam_t, w, None, None)]
    # Multi-step grid with a partial edge block (B % tb != 0, C % 128 != 0), f32.
    x, t, w, lam_t = make_inputs(20, 48, jnp.float32)
    cases += [(x, t, lam_t, w, None, 8),
              (x, t, 0.3, w, None, 8)]
    # bf16 inputs (native DMA dtype, in-kernel upcast), producer-supplied argmax.
    x, t, w, lam_t = make_inputs(20, 48, jnp.bfloat16)
    amax = jnp.argmax(t.astype(jnp.float32), axis=-1).astype(jnp.int32)
    cases += [(x, t, 0.8, w, amax, None),
              (x, t, lam_t, w, None, None)]

    ok = True
    for (xc, tc, lam, wc, amax_c, tr) in cases:
        loss, scores = soft_target_cross_entropy_info_v3(
            xc, tc, lam, wc, target_argmax=amax_c, tile_rows=tr)
        loss, scores = jax.block_until_ready((loss, scores))
        loss_ref, scores_ref = _reference(xc, tc, lam, wc)
        ok &= bool(jnp.allclose(loss, loss_ref, atol=2e-5, rtol=2e-5))
        ok &= bool(jnp.allclose(scores, scores_ref, atol=2e-5, rtol=2e-5))

    if ok:
        print("KERNEL_OK")
    else:
        print("MISMATCH")
</pallas_src>

<mosaic_0001>
module attributes {stable_mosaic.version = 11 : i64} {
  func.func @_ce_scalar_lam_kernel(%arg0: i32, %arg1: memref<8x16xf32, #tpu.memory_space<vmem>>, %arg2: memref<8x16xf32, #tpu.memory_space<vmem>>, %arg3: memref<8x2xi32, #tpu.memory_space<vmem>>, %arg4: memref<8x8xf32, #tpu.memory_space<vmem>>) attributes {dimension_semantics = [#tpu.dimension_semantics<parallel>], iteration_bounds = array<i64: 1>, scalar_prefetch = 0 : i64, scratch_operands = 0 : i64, tpu.core_type = #tpu.core_type<tc>, window_params = [{transform_indices = @transform_0, window_bounds = array<i64: 8, 16>}, {transform_indices = @transform_1, window_bounds = array<i64: 8, 16>}, {transform_indices = @transform_2, window_bounds = array<i64: 8, 2>}, {transform_indices = @transform_3, window_bounds = array<i64: 8, 8>}]} {
    %c0 = arith.constant 0 : index
    %c0_0 = arith.constant 0 : index
    %0 = vector.load %arg1[%c0, %c0_0] : memref<8x16xf32, #tpu.memory_space<vmem>>, vector<8x16xf32>
    %c0_1 = arith.constant 0 : index
    %c0_2 = arith.constant 0 : index
    %1 = vector.load %arg2[%c0_1, %c0_2] : memref<8x16xf32, #tpu.memory_space<vmem>>, vector<8x16xf32>
    %cst = arith.constant dense<0xFF800000> : vector<8xf32>
    %2 = vector.multi_reduction <maximumf>, %0, %cst [1] : vector<8x16xf32> to vector<8xf32>
    %3 = vector.shape_cast %2 : vector<8xf32> to vector<8x1xf32>
    %4 = vector.broadcast %3 : vector<8x1xf32> to vector<8x16xf32>
    %5 = arith.subf %0, %4 : vector<8x16xf32>
    %6 = math.exp %5 : vector<8x16xf32>
    %cst_3 = arith.constant dense<0.000000e+00> : vector<8xf32>
    %7 = vector.multi_reduction <add>, %6, %cst_3 [1] : vector<8x16xf32> to vector<8xf32>
    %8 = vector.shape_cast %7 : vector<8xf32> to vector<8x1xf32>
    %9 = math.log %8 : vector<8x1xf32>
    %cst_4 = arith.constant dense<0.000000e+00> : vector<8xf32>
    %10 = vector.multi_reduction <add>, %1, %cst_4 [1] : vector<8x16xf32> to vector<8xf32>
    %11 = vector.shape_cast %10 : vector<8xf32> to vector<8x1xf32>
    %12 = arith.mulf %9, %11 : vector<8x1xf32>
    %13 = arith.mulf %1, %5 : vector<8x16xf32>
    %cst_5 = arith.constant dense<0.000000e+00> : vector<8xf32>
    %14 = vector.multi_reduction <add>, %13, %cst_5 [1] : vector<8x16xf32> to vector<8xf32>
    %15 = vector.shape_cast %14 : vector<8xf32> to vector<8x1xf32>
    %16 = arith.subf %12, %15 : vector<8x1xf32>
    %17 = tpu.iota {dimensions = array<i32: 1>} : vector<8x16xi32>
    %c0_6 = arith.constant 0 : index
    %c0_7 = arith.constant 0 : index
    %18 = vector.load %arg3[%c0_6, %c0_7] : memref<8x2xi32, #tpu.memory_space<vmem>>, vector<8x1xi32>
    %19 = vector.broadcast %18 : vector<8x1xi32> to vector<8x16xi32>
    %20 = arith.cmpi eq, %17, %19 : vector<8x16xi32>
    %c0_8 = arith.constant 0 : index
    %c1 = arith.constant 1 : index
    %21 = vector.load %arg3[%c0_8, %c1] : memref<8x2xi32, #tpu.memory_space<vmem>>, vector<8x1xi32>
    %22 = vector.broadcast %21 : vector<8x1xi32> to vector<8x16xi32>
    %23 = arith.cmpi eq, %17, %22 : vector<8x16xi32>
    %cst_9 = arith.constant 0.000000e+00 : f32
    %24 = vector.broadcast %cst_9 : f32 to vector<8x16xf32>
    %25 = arith.select %20, %6, %24 : vector<8x16xi1>, vector<8x16xf32>
    %cst_10 = arith.constant dense<0.000000e+00> : vector<8xf32>
    %26 = vector.multi_reduction <add>, %25, %cst_10 [1] : vector<8x16xf32> to vector<8xf32>
    %27 = vector.shape_cast %26 : vector<8xf32> to vector<8x1xf32>
    %cst_11 = arith.constant 0.000000e+00 : f32
    %28 = vector.broadcast %cst_11 : f32 to vector<8x16xf32>
    %29 = arith.select %20, %1, %28 : vector<8x16xi1>, vector<8x16xf32>
    %cst_12 = arith.constant dense<0.000000e+00> : vector<8xf32>
    %30 = vector.multi_reduction <add>, %29, %cst_12 [1] : vector<8x16xf32> to vector<8xf32>
    %31 = vector.shape_cast %30 : vector<8xf32> to vector<8x1xf32>
    %cst_13 = arith.constant 0.000000e+00 : f32
    %32 = vector.broadcast %cst_13 : f32 to vector<8x16xf32>
    %33 = arith.select %23, %6, %32 : vector<8x16xi1>, vector<8x16xf32>
    %cst_14 = arith.constant dense<0.000000e+00> : vector<8xf32>
    %34 = vector.multi_reduction <add>, %33, %cst_14 [1] : vector<8x16xf32> to vector<8xf32>
    %35 = vector.shape_cast %34 : vector<8xf32> to vector<8x1xf32>
    %cst_15 = arith.constant 0.000000e+00 : f32
    %36 = vector.broadcast %cst_15 : f32 to vector<8x16xf32>
    %37 = arith.select %23, %1, %36 : vector<8x16xi1>, vector<8x16xf32>
    %cst_16 = arith.constant dense<0.000000e+00> : vector<8xf32>
    %38 = vector.multi_reduction <add>, %37, %cst_16 [1] : vector<8x16xf32> to vector<8xf32>
    %39 = vector.shape_cast %38 : vector<8xf32> to vector<8x1xf32>
    %40 = tpu.reciprocal %8 : vector<8x1xf32> -> vector<8x1xf32>
    %41 = arith.mulf %27, %40 : vector<8x1xf32>
    %42 = arith.subf %31, %41 : vector<8x1xf32>
    %43 = math.absf %42 : vector<8x1xf32>
    %44 = arith.mulf %35, %40 : vector<8x1xf32>
    %45 = arith.subf %39, %44 : vector<8x1xf32>
    %46 = math.absf %45 : vector<8x1xf32>
    %47 = tpu.iota {dimensions = array<i32: 1>} : vector<8x8xi32>
    %c0_i32 = arith.constant 0 : i32
    %48 = vector.broadcast %c0_i32 : i32 to vector<8x8xi32>
    %49 = arith.cmpi eq, %47, %48 : vector<8x8xi32>
    %c1_i32 = arith.constant 1 : i32
    %50 = vector.broadcast %c1_i32 : i32 to vector<8x8xi32>
    %51 = arith.cmpi eq, %47, %50 : vector<8x8xi32>
    %c2_i32 = arith.constant 2 : i32
    %52 = vector.broadcast %c2_i32 : i32 to vector<8x8xi32>
    %53 = arith.cmpi eq, %47, %52 : vector<8x8xi32>
    %cst_17 = arith.constant 0.000000e+00 : f32
    %54 = vector.shape_cast %46 : vector<8x1xf32> to vector<8x1xf32>
    %55 = vector.broadcast %54 : vector<8x1xf32> to vector<8x8xf32>
    %56 = vector.broadcast %cst_17 : f32 to vector<8x8xf32>
    %57 = arith.select %53, %55, %56 : vector<8x8xi1>, vector<8x8xf32>
    %58 = vector.shape_cast %43 : vector<8x1xf32> to vector<8x1xf32>
    %59 = vector.broadcast %58 : vector<8x1xf32> to vector<8x8xf32>
    %60 = arith.select %51, %59, %57 : vector<8x8xi1>, vector<8x8xf32>
    %61 = vector.shape_cast %16 : vector<8x1xf32> to vector<8x1xf32>
    %62 = vector.broadcast %61 : vector<8x1xf32> to vector<8x8xf32>
    %63 = arith.select %49, %62, %60 : vector<8x8xi1>, vector<8x8xf32>
    %c0_18 = arith.constant 0 : index
    %c0_19 = arith.constant 0 : index
    %64 = vector.load %arg4[%c0_18, %c0_19] : memref<8x8xf32, #tpu.memory_space<vmem>>, vector<8x8xf32>
    tpu.vector_store %arg4[%c0_18, %c0_19], %63 {strides = array<i32>} : memref<8x8xf32, #tpu.memory_space<vmem>>, vector<8x8xf32>,
    return
  }
  func.func @transform_0(%arg0: i32) -> (i32, i32) {
    %c0_i32 = arith.constant 0 : i32
    %c0_i32_0 = arith.constant 0 : i32
    return %arg0, %c0_i32 : i32, i32
  }
  func.func @transform_1(%arg0: i32) -> (i32, i32) {
    %c0_i32 = arith.constant 0 : i32
    %c0_i32_0 = arith.constant 0 : i32
    return %arg0, %c0_i32 : i32, i32
  }
  func.func @transform_2(%arg0: i32) -> (i32, i32) {
    %c0_i32 = arith.constant 0 : i32
    %c0_i32_0 = arith.constant 0 : i32
    return %arg0, %c0_i32 : i32, i32
  }
  func.func @transform_3(%arg0: i32) -> (i32, i32) {
    %c0_i32 = arith.constant 0 : i32
    %c0_i32_0 = arith.constant 0 : i32
    return %arg0, %c0_i32 : i32, i32
  }
}

</mosaic_0001>

<bundles_post_ra>
// kernel: tpu_custom_call.1
= control target key start
LH: loop header
LB: loop body
LE: loop exit
PB: predicated region body
PF: predicated region fallthrough
CT: control target
= control target key end

     0   :  { %8 = vsyncpa [#allocation3], 0  ;;  %s229_s0 = inlined_call_operand.vmem [shape: f32[8,16], index: 0, kind: input, shape index: {}]   ;;  %s230_s1 = inlined_call_operand.hbm [shape: f32[8,16], index: 1, kind: input, shape index: {}]   ;;  %s231_s2 = inlined_call_operand.vmem [shape: s32[8,2], index: 2, kind: input, shape index: {}]   ;;  %s232_s3 = inlined_call_operand.hbm [shape: f32[8,8], index: 3, kind: output, shape index: {}]  }
   0x1   :  { %9 = vsyncpa [#allocation4], 0  ;;  %s167_s12 = smov [#allocation2]   ;;  %s119_s16 = scalar_lea.hbm %s230_s1, 128 }
   0x2   :  { %s18_s13 = sshll.u32 %s167_s12, 4  ;;  %p120_p0 = scmp.ne.s32.totalorder %s230_s1, %s119_s16  ;;  %s19_s13 = int_to_ptr.vmem [resolvable:$true] %s18_s13 }
   0x3   :  { %p123_p1 = scmp.lt.u32.totalorder %s119_s16, %s230_s1 }
   0x5   :  { %p125_p2 = pnand %p123_p1, %p120_p0 }
   0x7   :  { %128 = shalt.err (!%p125_p2)
}
   0x8   :  { %s129_s21 = scalar_lea.vmem %s19_s13, 128  ;;  %p134_p4 = scmp.lt.s32.totalorder %s19_s13, %s19_s13 }
   0x9   :  { %p130_p3 = scmp.ne.s32.totalorder %s19_s13, %s129_s21  ;;  %p135_p5 = scmp.lt.s32.totalorder %s129_s21, %s129_s21 }
   0xb   :  { %p136_p6 = por %p135_p5, %p134_p4 }
   0xd   :  { %p137_p7 = pnand %p136_p6, %p130_p3 }
   0xf   :  { %140 = shalt.err (!%p137_p7)
}
  0x10   :  { %21 = dma.hbm_to_vmem [thread:$0]  %s230_s1, 128, %s19_s13, [#allocation3]  }
  0x11   :  { %163 = dma.done.wait [#allocation3], 128  }
  0x12   :  { %164 = vsyncadd [#allocation3], 4294967168  ;;  %v168_v0 = vmov 1   ;;  %v169_v1 = vmov 0   ;;  %vm29_vm0 = vcmask 130048   ;;  %v27_v2 = vld [vmem:[%s229_s0] sm:$0xff]  ;;  %v50_v7 = vlaneseq }
  0x13   :  { %111 = vset.pattern.permute.xlu0 %v168_v0  ;;  %112 = vset.pattern.permute.xlu1 %v169_v1  ;;  %v52_v3 = vld [vmem:[%s231_s2] sm:$0xff]  ;;  %v30_v4 = vsel %vm29_vm0, %v27_v2, -inf  ;;  %s170_s0 = smov [#allocation5]   ;;  %vm90_vm6 = vcmask 64512  }
  0x14   :  { %54 = vperm.xlu1 %112, %v52_v3   ;;  %31 = vmax.xlane.f32.xlu0 %v30_v4  ;;  %v51_v9 = vand.u32 127, %v50_v7  ;;  %v28_v11 = vld [vmem:[#allocation2] sm:$0xff]  ;;  %s98_s1 = sshll.u32 %s170_s0, 4  ;;  %s99_s1 = int_to_ptr.vmem [resolvable:$true] %s98_s1 }
  0x15   :  { %v41_v23 = vsel %vm29_vm0, %v28_v11, 0.0  ;;  %s141_s2 = scalar_lea.vmem %s99_s1, 128  ;;  %p146_p9 = scmp.lt.s32.totalorder %s99_s1, %s99_s1 }
  0x16   :  { %vm86_vm3 = vcmp.eq.s32.totalorder %v51_v9, 2  ;;  %vm85_vm4 = vcmp.eq.s32.totalorder %v51_v9, 1  ;;  %vm84_vm5 = vcmp.eq.s32.totalorder %v51_v9, 0  ;;  %p142_p8 = scmp.ne.s32.totalorder %s99_s1, %s141_s2  ;;  %p147_p10 = scmp.lt.s32.totalorder %s141_s2, %s141_s2 }
  0x18   :  { %p148_p11 = por %p147_p10, %p146_p9 }
  0x1a   :  { %p149_p12 = pnand %p148_p11, %p142_p8 }
  0x2a   :  { %58 = vperm.xlu0 %111, %v52_v3  }
  0x93   :  { %v55_v13 = vpop.permute.xlu1 %54 }
  0x94   :  { %vm56_vm2 = vcmp.eq.s32.totalorder %v51_v9, %v55_v13 }
  0x95   :  { %v65_v16 = vsel %vm56_vm2, %v28_v11, 0.0 }
  0x96   :  { %v66_v18 = vsel %vm29_vm0, %v65_v16, 0.0 }
  0xa1   :  { %v32_v5 = vpop.xlane.xlu0 %31 }
  0xa2   :  { %v33_v6 = vsub.f32 %v27_v2, %v32_v5 }
  0xa4   :  { %v34_v8 = vmul.f32 1.442695, %v33_v6  ;;  %v45_v24 = vmul.f32 %v33_v6, %v28_v11 }
  0xa6   :  { %113 = vpow2.f32 %v34_v8  ;;  %v46_v25 = vsel %vm29_vm0, %v45_v24, 0.0 }
  0xa9   :  { %v59_v10 = vpop.permute.xlu0 %58 }
  0xaa   :  { %vm60_vm1 = vcmp.eq.s32.totalorder %v51_v9, %v59_v10 }
  0xab   :  { %v73_v12 = vsel %vm60_vm1, %v28_v11, 0.0 }
  0xac   :  { %v74_v14 = vsel %vm29_vm0, %v73_v12, 0.0 }
  0xad   :  { %75 = vadd.xlane.f32.xlu0 %v74_v14 }
  0xb0   :  { %v114_v15 = vpop.eup %113 }
  0xb1   :  { %v36_v17 = vsel %vm29_vm0, %v114_v15, 0.0  ;;  %v69_v19 = vsel %vm60_vm1, %v114_v15, 0.0  ;;  %v61_v21 = vsel %vm56_vm2, %v114_v15, 0.0 }
  0xb2   :  { %37 = vadd.xlane.f32.xlu1 %v36_v17  ;;  %v70_v20 = vsel %vm29_vm0, %v69_v19, 0.0  ;;  %v62_v22 = vsel %vm29_vm0, %v61_v21, 0.0 }
  0xb6   :  { %67 = vadd.xlane.f32.xlu1 %v66_v18 }
  0xba   :  { %71 = vadd.xlane.f32.xlu1 %v70_v20 }
  0xbe   :  { %63 = vadd.xlane.f32.xlu1 %v62_v22 }
  0xc2   :  { %42 = vadd.xlane.f32.xlu1 %v41_v23 }
  0xc6   :  { %47 = vadd.xlane.f32.xlu1 %v46_v25 }
 0x13a   :  { %v76_v34 = vpop.xlane.xlu0 %75 }
 0x13f   :  { %v38_v26 = vpop.xlane.xlu1 %37 }
 0x140   :  { %115 = vrcp.f32 %v38_v26 }
 0x141   :  { %117 = vlog2.f32 %v38_v26 }
 0x143   :  { %v68_v27 = vpop.xlane.xlu1 %67 }
 0x147   :  { %v72_v28 = vpop.xlane.xlu1 %71 }
 0x14a   :  { %v116_v29 = vpop.eup %115 }
 0x14b   :  { %v64_v30 = vpop.xlane.xlu1 %63  ;;  %v81_v31 = vmul.f32 %v116_v29, %v72_v28  ;;  %v118_v33 = vpop.eup %117 }
 0x14c   :  { %v78_v32 = vmul.f32 %v116_v29, %v64_v30  ;;  %v40_v39 = vmul.f32 0.6931472, %v118_v33 }
 0x14d   :  { %v82_v35 = vsub.f32 %v76_v34, %v81_v31 }
 0x14e   :  { %v79_v36 = vsub.f32 %v68_v27, %v78_v32 }
 0x14f   :  { %v43_v37 = vpop.xlane.xlu1 %42  ;;  %v83_v38 = vand.u32 2147483647, %v82_v35 }
 0x150   :  { %v80_v40 = vand.u32 2147483647, %v79_v36  ;;  %v44_v42 = vmul.f32 %v43_v37, %v40_v39 }
 0x151   :  { %v87_v41 = vsel %vm86_vm3, %v83_v38, 0.0 }
 0x152   :  { %v88_v45 = vsel %vm85_vm4, %v80_v40, %v87_v41 }
 0x153   :  { %v48_v43 = vpop.xlane.xlu1 %47 }
 0x154   :  { %v49_v44 = vsub.f32 %v44_v42, %v48_v43 }
 0x156   :  { %v89_v46 = vsel %vm84_vm5, %v49_v44, %v88_v45 }
 0x157   :  { %91 = vst.msk [vmem:[#allocation5] sm:$0xff] %vm90_vm6, %v89_v46 }
 0x158   :  { %152 = shalt.err (!%p149_p12)
}
 0x159   :  { %s153_s30 = scalar_lea.hbm %s232_s3, 128 }
 0x15a   :  { %p154_p13 = scmp.ne.s32.totalorder %s232_s3, %s153_s30  ;;  %p157_p0 = scmp.lt.u32.totalorder %s153_s30, %s232_s3 }
 0x15c   :  { %p159_p1 = pnand %p157_p0, %p154_p13 }
 0x15e   :  { %162 = shalt.err (!%p159_p1)
}
 0x15f   :  { %101 = dma.vmem_to_hbm [thread:$0]  %s99_s1, 128, %s232_s3, [#allocation4]  }
 0x160   :  { %165 = dma.done.wait [#allocation4], 128  }
 0x161   :  { %166 = vsyncadd [#allocation4], 4294967168 }
 0x162   :  { %105 = vsyncpa [#allocation3], 1 }
 0x163   :  { %106 = vsyncpa [#allocation4], 1 }

</bundles_post_ra>
